<compile_context>
chip_gen: v5e
topology: v5e:2x2
jax: 0.10.0
libtpu: 0.0.40
codegen_flags: <defaults>
</compile_context>

<pallas_src>
import math

import jax
import jax.numpy as jnp
from jax.experimental import pallas as pl
from jax.experimental.pallas import tpu as pltpu


def flash_attention_kernel(q_ref, k_ref, v_ref, o_ref, m_scr, l_scr, acc_scr):
    """Grid = (batch, q_tiles, kv_tiles).

    Per-step refs (batch dim squeezed by the BlockSpec):
      q:   (H, tq, hd) bf16   pre-scaled query heads for this (batch, q-tile)
      k,v: (H, tk, hd) bf16   key / value heads for this (batch, kv-tile)
      o:   (H, tq, hd) bf16   context output (written on the last kv step)
    Scratch (resident across the kv reduction axis):
      m_scr, l_scr: (H, tq, 1) f32   online-softmax running max / sum
      acc_scr:      (H, tq, hd) f32  unnormalized context accumulator
    """
    ki = pl.program_id(2)

    @pl.when(ki == 0)
    def _init():
        m_scr[...] = jnp.full(m_scr.shape, -jnp.inf, m_scr.dtype)
        l_scr[...] = jnp.zeros(l_scr.shape, l_scr.dtype)
        acc_scr[...] = jnp.zeros(acc_scr.shape, acc_scr.dtype)

    # Head-batched scores: (H, tq, hd) x (H, tk, hd) -> (H, tq, tk); no k.T,
    # no per-head lane slicing or relayouts.
    s = jnp.einsum("hqd,hkd->hqk", q_ref[...], k_ref[...],
                   preferred_element_type=jnp.float32)

    # Online (flash) softmax update.  Attention-weight dropout is identity in
    # eval mode; mask=None path only.
    m_prev = m_scr[...]
    m_new = jnp.maximum(m_prev, jnp.max(s, axis=-1, keepdims=True))
    alpha = jnp.exp(m_prev - m_new)
    p = jnp.exp(s - m_new)                       # unnormalized probabilities
    l_scr[...] = alpha * l_scr[...] + jnp.sum(p, axis=-1, keepdims=True)
    pv = jnp.einsum("hqk,hkd->hqd", p.astype(jnp.bfloat16), v_ref[...],
                    preferred_element_type=jnp.float32)      # (H, tq, hd)
    acc_scr[...] = alpha * acc_scr[...] + pv
    m_scr[...] = m_new

    @pl.when(ki == pl.num_programs(2) - 1)
    def _finalize():
        # Normalize the small (H, tq, hd) context (EUP reciprocal), not the
        # (H, tq, tk) probabilities.
        o_ref[...] = (acc_scr[...] * pl.reciprocal(l_scr[...], approx=True)
                      ).astype(o_ref.dtype)


def _round_up(n, m):
    return ((n + m - 1) // m) * m


def multi_head_attention(query, key, value, params, num_heads,
                         *, q_tile=256, kv_tile=256):
    """query/key/value: (S, B, E) as in the PyTorch module. Returns (S, B, E).

    Note: tq=tk=256 is a v7x-safe default; on v5e/v6e (128 MiB VMEM) kv_tile
    can be raised (e.g. 512) to amortize per-step overhead.
    """
    S, B, E = query.shape
    assert E % num_heads == 0
    H = num_heads
    hd = E // H
    inv_scale = 1.0 / math.sqrt(hd)

    tq = min(q_tile, S)
    tk = min(kv_tile, S)
    assert S % tq == 0 and S % tk == 0, "TODO(synk): ragged sequence tiles"

    f32 = jnp.float32
    bf16 = jnp.bfloat16

    # ---- Projections hoisted out of the kernel: one full-width GEMM each
    # (PyTorch Linear: y = x @ W^T + b), emitted head-major (B, H, S, hd). ----
    def project_heads(x, w, b):
        y = jnp.einsum("sbe,oe->sbo", x, w,
                       preferred_element_type=f32) + b              # (S, B, E)
        return jnp.transpose(y.reshape(S, B, H, hd), (1, 2, 0, 3))   # (B,H,S,hd)

    # Fold 1/sqrt(hd) into Q; ship attention operands to the kernel in bf16.
    q_h = (project_heads(query, params["wq"], params["bq"]) * inv_scale).astype(bf16)
    k_h = project_heads(key, params["wk"], params["bk"]).astype(bf16)
    v_h = project_heads(value, params["wv"], params["bv"]).astype(bf16)

    grid = (B, S // tq, S // tk)

    q_spec = pl.BlockSpec((None, H, tq, hd), lambda b, qi, ki: (b, 0, qi, 0))
    kv_spec = pl.BlockSpec((None, H, tk, hd), lambda b, qi, ki: (b, 0, ki, 0))
    out_spec = pl.BlockSpec((None, H, tq, hd), lambda b, qi, ki: (b, 0, qi, 0))

    # Explicit scoped-VMEM budget from the lane-padded working set.
    hd_l = _round_up(hd, 128)
    tq_s = _round_up(tq, 8)
    tk_s = _round_up(tk, 8)
    est = (2 * H * tq_s * hd_l * 2          # q block, double-buffered bf16
           + 2 * 2 * H * tk_s * hd_l * 2    # k + v blocks, double-buffered bf16
           + 2 * H * tq_s * hd_l * 2        # output block, double-buffered bf16
           + 2 * H * tq_s * 128 * 4         # m, l scratch (lane-padded to 128)
           + H * tq_s * hd_l * 4            # acc scratch
           + 2 * H * tq_s * tk_s * 4)       # score / prob f32 intermediates
    vmem_limit = min(48 * 1024 * 1024, max(32 * 1024 * 1024, int(1.5 * est)))

    ctx = pl.pallas_call(
        flash_attention_kernel,
        out_shape=jax.ShapeDtypeStruct((B, H, S, hd), bf16),
        grid=grid,
        in_specs=[q_spec, kv_spec, kv_spec],
        out_specs=out_spec,
        scratch_shapes=[
            pltpu.VMEM((H, tq, 1), f32),    # running max
            pltpu.VMEM((H, tq, 1), f32),    # running sum
            pltpu.VMEM((H, tq, hd), f32),   # context accumulator
        ],
        compiler_params=pltpu.CompilerParams(
            dimension_semantics=("parallel", "parallel", "arbitrary"),
            vmem_limit_bytes=vmem_limit),
    )(q_h, k_h, v_h)

    # Head -> lane reassembly + output projection as one full-width XLA GEMM
    # (also a full-MXU-width accumulation; no serial per-head add chain).
    ctx_sbe = jnp.transpose(ctx, (2, 0, 1, 3)).reshape(S, B, E).astype(f32)
    out = jnp.einsum("sbe,oe->sbo", ctx_sbe, params["wo"],
                     preferred_element_type=f32) + params["bo"]
    return out.astype(query.dtype)


def mha_reference(query, key, value, params, num_heads):
    """Pure-JAX f32 reference mirroring the PyTorch forward (eval mode, no mask)."""
    S, B, E = query.shape
    hd = E // num_heads
    scale = math.sqrt(hd)

    def lin(x, w, b):  # (S,B,E) @ (out,in)^T + (out,)
        return jnp.einsum("sbe,oe->sbo", x, w) + b

    Q = lin(query, params["wq"], params["bq"]).reshape(S, B, num_heads, hd)
    K = lin(key, params["wk"], params["bk"]).reshape(S, B, num_heads, hd)
    V = lin(value, params["wv"], params["bv"]).reshape(S, B, num_heads, hd)
    Q = jnp.transpose(Q, (1, 2, 0, 3))
    K = jnp.transpose(K, (1, 2, 0, 3))
    V = jnp.transpose(V, (1, 2, 0, 3))
    scores = jnp.einsum("bhqd,bhkd->bhqk", Q, K) / scale
    w = jax.nn.softmax(scores, axis=-1)
    out = jnp.einsum("bhqk,bhkd->bhqd", w, V)
    out = jnp.transpose(out, (2, 0, 1, 3)).reshape(S, B, E)
    return lin(out, params["wo"], params["bo"])


def init_params(key, embedding_dim):
    ks = jax.random.split(key, 8)
    E = embedding_dim
    std = 1.0 / math.sqrt(E)
    return {
        "wq": jax.random.normal(ks[0], (E, E), jnp.float32) * std,
        "bq": jax.random.normal(ks[1], (E,), jnp.float32) * std,
        "wk": jax.random.normal(ks[2], (E, E), jnp.float32) * std,
        "bk": jax.random.normal(ks[3], (E,), jnp.float32) * std,
        "wv": jax.random.normal(ks[4], (E, E), jnp.float32) * std,
        "bv": jax.random.normal(ks[5], (E,), jnp.float32) * std,
        "wo": jax.random.normal(ks[6], (E, E), jnp.float32) * std,
        "bo": jax.random.normal(ks[7], (E,), jnp.float32) * std,
    }


if __name__ == "__main__":
    def run_case(S, B, E, H, q_tile=256, kv_tile=256):
        root = jax.random.PRNGKey(0)
        k_q, k_k, k_v, k_p = jax.random.split(root, 4)
        query = jax.random.normal(k_q, (S, B, E), jnp.float32)
        key_t = jax.random.normal(k_k, (S, B, E), jnp.float32)
        value = jax.random.normal(k_v, (S, B, E), jnp.float32)
        params = init_params(k_p, E)

        out = multi_head_attention(query, key_t, value, params, num_heads=H,
                                   q_tile=q_tile, kv_tile=kv_tile)
        out = jax.block_until_ready(out)
        ref = jax.block_until_ready(
            mha_reference(query, key_t, value, params, num_heads=H))
        assert out.shape == (S, B, E)
        # bf16 attention operands (f32 accumulation) vs pure-f32 reference.
        assert jnp.allclose(out, ref, rtol=2e-2, atol=2e-2), (
            f"mismatch vs reference at S={S} B={B} E={E} H={H}")

    # Small smoke test at the module-implied shapes.
    run_case(S=8, B=2, E=32, H=4)
    # Aligned-tile test: exercises (8,128)-aligned blocks and the multi-kv-step
    # online-softmax accumulation path.
    run_case(S=256, B=2, E=256, H=4, q_tile=128, kv_tile=128)

    print("KERNEL_OK")
</pallas_src>

<mosaic_0001>
module attributes {stable_mosaic.version = 11 : i64} {
  func.func @flash_attention_kernel(%arg0: i32, %arg1: i32, %arg2: i32, %arg3: memref<1x4x8x8xbf16, #tpu.memory_space<vmem>>, %arg4: memref<1x4x8x8xbf16, #tpu.memory_space<vmem>>, %arg5: memref<1x4x8x8xbf16, #tpu.memory_space<vmem>>, %arg6: memref<1x4x8x8xbf16, #tpu.memory_space<vmem>>, %arg7: memref<4x8x1xf32, #tpu.memory_space<vmem>>, %arg8: memref<4x8x1xf32, #tpu.memory_space<vmem>>, %arg9: memref<4x8x8xf32, #tpu.memory_space<vmem>>) attributes {dimension_semantics = [#tpu.dimension_semantics<parallel>, #tpu.dimension_semantics<parallel>, #tpu.dimension_semantics<arbitrary>], iteration_bounds = array<i64: 2, 1, 1>, scalar_prefetch = 0 : i64, scratch_operands = 3 : i64, tpu.core_type = #tpu.core_type<tc>, window_params = [{transform_indices = @transform_0, window_bounds = array<i64: 1, 4, 8, 8>}, {transform_indices = @transform_1, window_bounds = array<i64: 1, 4, 8, 8>}, {transform_indices = @transform_2, window_bounds = array<i64: 1, 4, 8, 8>}, {transform_indices = @transform_3, window_bounds = array<i64: 1, 4, 8, 8>}]} {
    %c0_i32 = arith.constant 0 : i32
    %0 = arith.cmpi eq, %arg2, %c0_i32 : i32
    %1 = arith.extui %0 : i1 to i32
    %c0_i32_0 = arith.constant 0 : i32
    %2 = arith.cmpi ne, %1, %c0_i32_0 : i32
    scf.if %2 {
      %cst_35 = arith.constant 0xFF800000 : f32
      %36 = vector.broadcast %cst_35 : f32 to vector<4x8x1xf32>
      %c0_36 = arith.constant 0 : index
      %c0_37 = arith.constant 0 : index
      %c0_38 = arith.constant 0 : index
      %37 = vector.load %arg7[%c0_36, %c0_37, %c0_38] : memref<4x8x1xf32, #tpu.memory_space<vmem>>, vector<4x8x1xf32>
      tpu.vector_store %arg7[%c0_36, %c0_37, %c0_38], %36 {strides = array<i32>} : memref<4x8x1xf32, #tpu.memory_space<vmem>>, vector<4x8x1xf32>,
      %cst_39 = arith.constant 0.000000e+00 : f32
      %38 = vector.broadcast %cst_39 : f32 to vector<4x8x1xf32>
      %c0_40 = arith.constant 0 : index
      %c0_41 = arith.constant 0 : index
      %c0_42 = arith.constant 0 : index
      %39 = vector.load %arg8[%c0_40, %c0_41, %c0_42] : memref<4x8x1xf32, #tpu.memory_space<vmem>>, vector<4x8x1xf32>
      tpu.vector_store %arg8[%c0_40, %c0_41, %c0_42], %38 {strides = array<i32>} : memref<4x8x1xf32, #tpu.memory_space<vmem>>, vector<4x8x1xf32>,
      %cst_43 = arith.constant 0.000000e+00 : f32
      %40 = vector.broadcast %cst_43 : f32 to vector<4x8x8xf32>
      %c0_44 = arith.constant 0 : index
      %c0_45 = arith.constant 0 : index
      %c0_46 = arith.constant 0 : index
      %41 = vector.load %arg9[%c0_44, %c0_45, %c0_46] : memref<4x8x8xf32, #tpu.memory_space<vmem>>, vector<4x8x8xf32>
      tpu.vector_store %arg9[%c0_44, %c0_45, %c0_46], %40 {strides = array<i32>} : memref<4x8x8xf32, #tpu.memory_space<vmem>>, vector<4x8x8xf32>,
    } else {
    }
    %c0 = arith.constant 0 : index
    %c0_1 = arith.constant 0 : index
    %c0_2 = arith.constant 0 : index
    %c0_3 = arith.constant 0 : index
    %3 = vector.load %arg3[%c0, %c0_1, %c0_2, %c0_3] : memref<1x4x8x8xbf16, #tpu.memory_space<vmem>>, vector<1x4x8x8xbf16>
    %4 = vector.shape_cast %3 : vector<1x4x8x8xbf16> to vector<4x8x8xbf16>
    %c0_4 = arith.constant 0 : index
    %c0_5 = arith.constant 0 : index
    %c0_6 = arith.constant 0 : index
    %c0_7 = arith.constant 0 : index
    %5 = vector.load %arg4[%c0_4, %c0_5, %c0_6, %c0_7] : memref<1x4x8x8xbf16, #tpu.memory_space<vmem>>, vector<1x4x8x8xbf16>
    %6 = vector.shape_cast %5 : vector<1x4x8x8xbf16> to vector<4x8x8xbf16>
    "tpu.trace_start"() <{level = 10 : i32, message = "hqd,hkd->hqk"}> : () -> ()
    %cst = arith.constant dense<0.000000e+00> : vector<4x8x8xf32>
    %7 = tpu.matmul %4, %6, %cst {dimension_numbers = #tpu.dot_dimension_numbers<[2], [2], [1], [1], [0, 0, 0, 1, 1, 1], [0], [0]>} : vector<4x8x8xbf16>, vector<4x8x8xbf16>, vector<4x8x8xf32> -> vector<4x8x8xf32>
    "tpu.trace_stop"() : () -> ()
    %c0_8 = arith.constant 0 : index
    %c0_9 = arith.constant 0 : index
    %c0_10 = arith.constant 0 : index
    %8 = vector.load %arg7[%c0_8, %c0_9, %c0_10] : memref<4x8x1xf32, #tpu.memory_space<vmem>>, vector<4x8x1xf32>
    %cst_11 = arith.constant dense<0xFF800000> : vector<4x8xf32>
    %9 = vector.multi_reduction <maximumf>, %7, %cst_11 [2] : vector<4x8x8xf32> to vector<4x8xf32>
    %10 = vector.shape_cast %9 : vector<4x8xf32> to vector<4x8x1xf32>
    %11 = arith.maximumf %8, %10 : vector<4x8x1xf32>
    %12 = arith.subf %8, %11 : vector<4x8x1xf32>
    %13 = math.exp %12 : vector<4x8x1xf32>
    %14 = vector.broadcast %11 : vector<4x8x1xf32> to vector<4x8x8xf32>
    %15 = arith.subf %7, %14 : vector<4x8x8xf32>
    %16 = math.exp %15 : vector<4x8x8xf32>
    %c0_12 = arith.constant 0 : index
    %c0_13 = arith.constant 0 : index
    %c0_14 = arith.constant 0 : index
    %17 = vector.load %arg8[%c0_12, %c0_13, %c0_14] : memref<4x8x1xf32, #tpu.memory_space<vmem>>, vector<4x8x1xf32>
    %18 = arith.mulf %13, %17 : vector<4x8x1xf32>
    %cst_15 = arith.constant dense<0.000000e+00> : vector<4x8xf32>
    %19 = vector.multi_reduction <add>, %16, %cst_15 [2] : vector<4x8x8xf32> to vector<4x8xf32>
    %20 = vector.shape_cast %19 : vector<4x8xf32> to vector<4x8x1xf32>
    %21 = arith.addf %18, %20 : vector<4x8x1xf32>
    %c0_16 = arith.constant 0 : index
    %c0_17 = arith.constant 0 : index
    %c0_18 = arith.constant 0 : index
    %22 = vector.load %arg8[%c0_16, %c0_17, %c0_18] : memref<4x8x1xf32, #tpu.memory_space<vmem>>, vector<4x8x1xf32>
    tpu.vector_store %arg8[%c0_16, %c0_17, %c0_18], %21 {strides = array<i32>} : memref<4x8x1xf32, #tpu.memory_space<vmem>>, vector<4x8x1xf32>,
    %23 = arith.truncf %16 : vector<4x8x8xf32> to vector<4x8x8xbf16>
    %c0_19 = arith.constant 0 : index
    %c0_20 = arith.constant 0 : index
    %c0_21 = arith.constant 0 : index
    %c0_22 = arith.constant 0 : index
    %24 = vector.load %arg5[%c0_19, %c0_20, %c0_21, %c0_22] : memref<1x4x8x8xbf16, #tpu.memory_space<vmem>>, vector<1x4x8x8xbf16>
    %25 = vector.shape_cast %24 : vector<1x4x8x8xbf16> to vector<4x8x8xbf16>
    "tpu.trace_start"() <{level = 10 : i32, message = "hqk,hkd->hqd"}> : () -> ()
    %cst_23 = arith.constant dense<0.000000e+00> : vector<4x8x8xf32>
    %26 = tpu.matmul %23, %25, %cst_23 {dimension_numbers = #tpu.dot_dimension_numbers<[2], [1], [1], [2], [0, 0, 0, 1, 1, 2], [0], [0]>} : vector<4x8x8xbf16>, vector<4x8x8xbf16>, vector<4x8x8xf32> -> vector<4x8x8xf32>
    "tpu.trace_stop"() : () -> ()
    %c0_24 = arith.constant 0 : index
    %c0_25 = arith.constant 0 : index
    %c0_26 = arith.constant 0 : index
    %27 = vector.load %arg9[%c0_24, %c0_25, %c0_26] : memref<4x8x8xf32, #tpu.memory_space<vmem>>, vector<4x8x8xf32>
    %28 = vector.broadcast %13 : vector<4x8x1xf32> to vector<4x8x8xf32>
    %29 = arith.mulf %28, %27 : vector<4x8x8xf32>
    %30 = arith.addf %29, %26 : vector<4x8x8xf32>
    %c0_27 = arith.constant 0 : index
    %c0_28 = arith.constant 0 : index
    %c0_29 = arith.constant 0 : index
    %31 = vector.load %arg9[%c0_27, %c0_28, %c0_29] : memref<4x8x8xf32, #tpu.memory_space<vmem>>, vector<4x8x8xf32>
    tpu.vector_store %arg9[%c0_27, %c0_28, %c0_29], %30 {strides = array<i32>} : memref<4x8x8xf32, #tpu.memory_space<vmem>>, vector<4x8x8xf32>,
    %c0_30 = arith.constant 0 : index
    %c0_31 = arith.constant 0 : index
    %c0_32 = arith.constant 0 : index
    %32 = vector.load %arg7[%c0_30, %c0_31, %c0_32] : memref<4x8x1xf32, #tpu.memory_space<vmem>>, vector<4x8x1xf32>
    tpu.vector_store %arg7[%c0_30, %c0_31, %c0_32], %11 {strides = array<i32>} : memref<4x8x1xf32, #tpu.memory_space<vmem>>, vector<4x8x1xf32>,
    %c0_i32_33 = arith.constant 0 : i32
    %33 = arith.cmpi eq, %arg2, %c0_i32_33 : i32
    %34 = arith.extui %33 : i1 to i32
    %c0_i32_34 = arith.constant 0 : i32
    %35 = arith.cmpi ne, %34, %c0_i32_34 : i32
    scf.if %35 {
      %c0_35 = arith.constant 0 : index
      %c0_36 = arith.constant 0 : index
      %c0_37 = arith.constant 0 : index
      %36 = vector.load %arg9[%c0_35, %c0_36, %c0_37] : memref<4x8x8xf32, #tpu.memory_space<vmem>>, vector<4x8x8xf32>
      %c0_38 = arith.constant 0 : index
      %c0_39 = arith.constant 0 : index
      %c0_40 = arith.constant 0 : index
      %37 = vector.load %arg8[%c0_38, %c0_39, %c0_40] : memref<4x8x1xf32, #tpu.memory_space<vmem>>, vector<4x8x1xf32>
      %38 = tpu.reciprocal %37 {approx = true} : vector<4x8x1xf32> -> vector<4x8x1xf32>
      %39 = vector.broadcast %38 : vector<4x8x1xf32> to vector<4x8x8xf32>
      %40 = arith.mulf %36, %39 : vector<4x8x8xf32>
      %41 = arith.truncf %40 : vector<4x8x8xf32> to vector<4x8x8xbf16>
      %c0_41 = arith.constant 0 : index
      %c0_42 = arith.constant 0 : index
      %c0_43 = arith.constant 0 : index
      %c0_44 = arith.constant 0 : index
      %42 = vector.load %arg6[%c0_41, %c0_42, %c0_43, %c0_44] : memref<1x4x8x8xbf16, #tpu.memory_space<vmem>>, vector<1x4x8x8xbf16>
      %43 = vector.shape_cast %42 : vector<1x4x8x8xbf16> to vector<4x8x8xbf16>
      %44 = vector.shape_cast %41 : vector<4x8x8xbf16> to vector<1x4x8x8xbf16>
      tpu.vector_store %arg6[%c0_41, %c0_42, %c0_43, %c0_44], %44 {strides = array<i32>} : memref<1x4x8x8xbf16, #tpu.memory_space<vmem>>, vector<1x4x8x8xbf16>,
    } else {
    }
    return
  }
  func.func @transform_0(%arg0: i32, %arg1: i32, %arg2: i32) -> (i32, i32, i32, i32) {
    %c0_i32 = arith.constant 0 : i32
    %c0_i32_0 = arith.constant 0 : i32
    %c0_i32_1 = arith.constant 0 : i32
    return %arg0, %c0_i32, %arg1, %c0_i32_0 : i32, i32, i32, i32
  }
  func.func @transform_1(%arg0: i32, %arg1: i32, %arg2: i32) -> (i32, i32, i32, i32) {
    %c0_i32 = arith.constant 0 : i32
    %c0_i32_0 = arith.constant 0 : i32
    %c0_i32_1 = arith.constant 0 : i32
    return %arg0, %c0_i32, %arg2, %c0_i32_0 : i32, i32, i32, i32
  }
  func.func @transform_2(%arg0: i32, %arg1: i32, %arg2: i32) -> (i32, i32, i32, i32) {
    %c0_i32 = arith.constant 0 : i32
    %c0_i32_0 = arith.constant 0 : i32
    %c0_i32_1 = arith.constant 0 : i32
    return %arg0, %c0_i32, %arg2, %c0_i32_0 : i32, i32, i32, i32
  }
  func.func @transform_3(%arg0: i32, %arg1: i32, %arg2: i32) -> (i32, i32, i32, i32) {
    %c0_i32 = arith.constant 0 : i32
    %c0_i32_0 = arith.constant 0 : i32
    %c0_i32_1 = arith.constant 0 : i32
    return %arg0, %c0_i32, %arg1, %c0_i32_0 : i32, i32, i32, i32
  }
}

</mosaic_0001>

<bundles_post_ra>
// kernel: tpu_custom_call.1
= control target key start
LH: loop header
LB: loop body
LE: loop exit
PB: predicated region body
PF: predicated region fallthrough
CT: control target
= control target key end

     0   :  { %s1434_s0 = inlined_call_operand.hbm [shape: bf16[2,4,8,8], index: 0, kind: input, shape index: {}]   ;;  %s1435_s1 = inlined_call_operand.hbm [shape: bf16[2,4,8,8], index: 1, kind: input, shape index: {}]   ;;  %s1436_s2 = inlined_call_operand.hbm [shape: bf16[2,4,8,8], index: 2, kind: input, shape index: {}]   ;;  %s1437_s3 = inlined_call_operand.hbm [shape: bf16[2,4,8,8], index: 3, kind: output, shape index: {}]  }
   0x1   :  { %1443 = sst [smem:[#allocation20_spill]] %s1435_s1 }
   0x2   :  { %8 = vsyncpa [#allocation6], 0 }
   0x3   :  { %10 = vsyncpa [#allocation6 + $0x1], 0 }
   0x4   :  { %11 = vsyncpa [#allocation9], 0 }
   0x5   :  { %13 = vsyncpa [#allocation9 + $0x1], 0 }
   0x6   :  { %14 = vsyncpa [#allocation7], 0 }
   0x7   :  { %16 = vsyncpa [#allocation7 + $0x1], 0  ;;  %s1170_s12 = smov 0   ;;  %s1172_s13 = smov 0  }
   0x8   :  { %s1174_s14 = smov 0   ;;  %s1176_s15 = smov 0  }
   0x9   :  { %s1178_s16 = smov 0   ;;  %s1180_s17 = smov 0  }
   0xa LB: > { %1444 = sst [smem:[#allocation15_spill]] %s1129_s14  ;;  %s1201_s18 = sadd.s32 4294967295, %s1141_s17   ;;  %s1141_s17 = sphi %s1180_s17, %s22_s17   ;;  %s1137_s16 = sphi %s1178_s16, %s1460_s16   ;;  %s1133_s15 = sphi %s1176_s15, %s1459_s15   ;;  %s1129_s14 = sphi %s1174_s14, %s1463_s14   ;;  %s1125_s13 = sphi %s1172_s13, %s1462_s13   ;;  %s1121_s12 = sphi %s1170_s12, %s1461_s12  }
   0xb   : > { %1445 = sst [smem:[#allocation16_spill]] %s1137_s16  ;;  %s825_s19 = sadd.s32 4294967294, %s1141_s17  }
   0xc   : > { %1446 = sst [smem:[#allocation17_spill]] %s1141_s17  ;;  %s41_s20 = sadd.s32 1, %s1137_s16 }
   0xd   : > { %s50_s21 = sadd.s32 1, %s1129_s14  ;;  %p43_p0 = scmp.ge.s32.totalorder %s41_s20, 2 }
   0xe   : > { %p57_p1 = scmp.ne.s32.totalorder %s1129_s14, %s1125_s13  ;;  %p58_p2 = scmp.eq.s32.totalorder %s1141_s17, 0 }
   0xf   : > { %p63_p3 = scmp.ne.s32.totalorder %s1125_s13, %s1121_s12  ;;  %s1465_s20 = smov (%p43_p0, %s41_s20), 0 }
  0x10   : > { %1447 = sst [smem:[#allocation18_spill]] %s1465_s20  ;;  %p1213_p4 = por %p58_p2, %p57_p1 }
  0x11   : > { %p64_p5 = scmp.eq.s32.totalorder %s1201_s18, 0  ;;  %s45_s23 = ssub.s32 %s1137_s16, %s1465_s20 }
  0x12   : > { %p145_p6 = scmp.eq.s32.totalorder %s1201_s18, 1  ;;  %p48_p7 = scmp.eq.s32.totalorder %s45_s23, 0 }
  0x13   : > { %p1221_p8 = por %p64_p5, %p63_p3  ;;  %p151_p10 = scmp.eq.s32.totalorder %s825_s19, 1 }
  0x14   : > { %p1225_p9 = por %p145_p6, %p57_p1  ;;  %p827_p12 = scmp.ge.s32.totalorder %s1141_s17, 2 }
  0x15   : > { %s1230_s26 = scalar_select %p48_p7, %s1129_s14, %s50_s21  }
  0x16   : > { %p1232_p11 = por %p151_p10, %p63_p3  ;;  %p881_p13 = scmp.lt.s32.totalorder %s1141_s17, 2 }
  0x17   : > { %1451 = sst [smem:[#allocation19_spill]] %s1230_s26  ;;  %s171_s28 = sand.u32 1, %s1129_s14  }
  0x18   : > { %s1239_s29 = sshll.u32 %s171_s28, 4  ;;  %s855_s30 = sshll.u32 %s1137_s16, 4 }
  0x19   : > { %p1244_p0 = pnand %p881_p13, %p1213_p4  ;;  %s194_s5 = sand.u32 1, %s1141_s17  }
  0x1a   : > { %s1454_s1 = sld [smem:[#allocation20_spill]]  ;;  %s198_s10 = scalar_lea.vmem [#allocation8], %s1239_s29 }
  0x1b   : > { %s207_s11 = sshll.u32 %s198_s10, 4  ;;  %s195_s19 = scalar_lea.sflag [#allocation9], %s194_s5  ;;  %s208_s11 = int_to_ptr.vmem [resolvable:$true] %s207_s11 }
  0x1c   : > { %s1143_s21 = smov 64   ;;  %s1144_s22 = smov 4  }
  0x1d   : > { %p837_p1 = scmp.ge.s32.totalorder %s1141_s17, 1  ;;  %p238_p2 = scmp.lt.s32.totalorder %s1141_s17, 3 }
  0x1e   : > { %s172_s5 = scalar_lea.sflag [#allocation6], %s171_s28  ;;  %s227_s16 = scalar_lea.hbm %s1436_s2, %s855_s30 }
  0x1f   : > { %p1257_p3 = pnand %p837_p1, %p238_p2  ;;  %s228_s26 = sshll.u32 %s227_s16, 4  ;;  %s229_s26 = int_to_ptr.hbm [resolvable:$true] %s228_s26 }
  0x20   : > { %s204_s8 = scalar_lea.hbm %s1454_s1, %s855_s30  ;;  %s175_s1 = scalar_lea.vmem [#allocation5], %s1239_s29 }
  0x21   : > { %s205_s9 = sshll.u32 %s204_s8, 4  ;;  %s181_s8 = scalar_lea.hbm %s1434_s0, %s855_s30  ;;  %s206_s9 = int_to_ptr.hbm [resolvable:$true] %s205_s9 }
  0x22   : > { %873 = dma.hbm_to_vmem [thread:$0]  (!%p1244_p0), %s206_s9, 256, %s208_s11, %s195_s19, %s1143_s21, %s1143_s21, %s1144_s22  }
  0x23   : > { %s182_s10 = sshll.u32 %s181_s8, 4  ;;  %s184_s20 = sshll.u32 %s175_s1, 4  ;;  %s183_s10 = int_to_ptr.hbm [resolvable:$true] %s182_s10  ;;  %s185_s20 = int_to_ptr.vmem [resolvable:$true] %s184_s20 }
  0x24   : > { %870 = dma.hbm_to_vmem [thread:$0]  (!%p1244_p0), %s183_s10, 256, %s185_s20, %s172_s5, %s1143_s21, %s1143_s21, %s1144_s22  }
  0x25   : > { %s221_s14 = scalar_lea.vmem [#allocation10], %s1239_s29  ;;  %242 = sbr.rel (%p1257_p3) target bundleno = 732 (0x2dc), region = 32 }
  0x26   : > { %s230_s17 = sshll.u32 %s221_s14, 4  ;;  %s1276_s1 = sand.u32 (!%p1257_p3), 1, %s1125_s13   ;;  %s231_s17 = int_to_ptr.vmem [resolvable:$true] %s230_s17 }
  0x27   : > { %876 = dma.hbm_to_vmem [thread:$0]  (!%p1244_p0), %s229_s26, 256, %s231_s17, %s195_s19, %s1143_s21, %s1143_s21, %s1144_s22  }
  0x28   : > { %s1279_s20 = sshll.u32 (!%p1257_p3), %s1276_s1, 4  ;;  %s245_s28 = scalar_lea.sflag (!%p1257_p3), [#allocation6], %s1276_s1 }
  0x29   : > { %s248_s16 = scalar_lea.vmem (!%p1257_p3), [#allocation5], %s1279_s20 }
  0x2a   : > { %1108 = dma.done.wait (%p1221_p8), %s245_s28, 256  }
  0x2b   : > { %1110 = vsyncadd (%p1221_p8), %s245_s28, 4294967040  ;;  %s254_s14 = sand.u32 1, %s1201_s18   ;;  %s258_s26 = scalar_lea.vmem [#allocation8], %s1279_s20 }
  0x2c   : > { %s255_s17 = scalar_lea.sflag [#allocation9], %s254_s14 }
  0x2d   : > { %1112 = dma.done.wait (%p1221_p8), %s255_s17, 512  }
  0x2e   : > { %1114 = vsyncadd (%p1221_p8), %s255_s17, 4294966784  ;;  %vm316_vm0 = vcmask 64512   ;;  %v325_v0 = vld [vmem:[%s258_s26] sm:$0xf]  ;;  %v327_v1 = vld [vmem:[%s258_s26 + $0x8] sm:$0xf] }
  0x2f   : > { %v334_v2 = vsel %vm316_vm0, %v325_v0, 0  ;;  %v372_v3 = vsel %vm316_vm0, %v327_v1, 0  ;;  %v326_v4 = vld [vmem:[%s258_s26 + $0x4] sm:$0xf]  ;;  %v328_v6 = vld [vmem:[%s258_s26 + $0xc] sm:$0xf] }
  0x30   : > { %343 = vmatpush.bf16.xpose.msra.mxu0 %v334_v2  ;;  %381 = vmatpush.bf16.xpose.msra.mxu2 %v372_v3  ;;  %v353_v5 = vsel %vm316_vm0, %v326_v4, 0  ;;  %v391_v7 = vsel %vm316_vm0, %v328_v6, 0  ;;  %v321_v8 = vld [vmem:[%s248_s16] sm:$0xf]  ;;  %v323_v9 = vld [vmem:[%s248_s16 + $0x8] sm:$0xf] }
  0x31   : > { %362 = vmatpush.bf16.xpose.msra.mxu1 %v353_v5  ;;  %400 = vmatpush.bf16.xpose.msra.mxu3 %v391_v7  ;;  %v322_v10 = vld [vmem:[%s248_s16 + $0x4] sm:$0xf]  ;;  %v324_v11 = vld [vmem:[%s248_s16 + $0xc] sm:$0xf]  ;;  %vm307_vm1 = vcmask 7168   ;;  %v1145_v12 = vmov -inf  }
  0x32   : > { %308 = vst.msk [vmem:[#allocation2] sm:$0xff] %vm307_vm1, %v1145_v12  ;;  %v1146_v25 = vmov 0   ;;  %v1147_v26 = vmov 0.0   ;;  %s268_s18 = scalar_lea.vmem [#allocation10], %s1279_s20  ;;  %vm510_vm2 = vcmask 1043456   ;;  %vm667_vm3 = vcmask 60416  }
  0x33   : > { %309 = vst.msk [vmem:[#allocation2 + $0x8] sm:$0xff] %vm307_vm1, %v1145_v12  ;;  %939 = vset.pattern.permute.xlu0 %v1146_v25  ;;  %938 = vset.pattern.permute.xlu2 %v1146_v25  ;;  %v505_v43 = vld [vmem:[%s268_s18 + $0x8] sm:$0xf]  ;;  %v506_v45 = vld [vmem:[%s268_s18 + $0xc] sm:$0xf]  ;;  %s301_s24 = scalar_lea.vmem [#allocation11], %s1279_s20 }
  0x34   : > { %310 = vst.msk [vmem:[#allocation2 + $0x10] sm:$0xff] %vm307_vm1, %v1145_v12  ;;  %940 = vset.pattern.permute.xlu1 %v1146_v25  ;;  %v550_v44 = vsel %vm510_vm2, %v505_v43, 0  ;;  %v569_v46 = vsel %vm510_vm2, %v506_v45, 0  ;;  %v503_v47 = vld [vmem:[%s268_s18] sm:$0xf]  ;;  %s858_s29 = sshll.u32 %s1133_s15, 4 }
  0x35   : > { %311 = vst.msk [vmem:[#allocation2 + $0x18] sm:$0xff] %vm307_vm1, %v1145_v12  ;;  %v512_v48 = vsel %vm510_vm2, %v503_v47, 0  ;;  %v504_v50 = vld [vmem:[%s268_s18 + $0x4] sm:$0xf]  ;;  %s685_s19 = scalar_lea.hbm %s1437_s3, %s858_s29  ;;  %s686_s21 = sshll.u32 %s301_s24, 4  ;;  %s687_s21 = int_to_ptr.vmem [resolvable:$true] %s686_s21 }
  0x36   : > { %314 = vst.msk [vmem:[#allocation3 + $0x10] sm:$0xff] %vm307_vm1, %v1147_v26  ;;  %v531_v52 = vsel %vm510_vm2, %v504_v50, 0  ;;  %s688_s22 = sshll.u32 %s685_s19, 4  ;;  %s673_s23 = scalar_lea.sflag [#allocation7], %s1276_s1  ;;  %s689_s22 = int_to_ptr.hbm [resolvable:$true] %s688_s22 }
  0x37   : > { %842 = vmatmul.msk.bf16.vlgmr.msra.gmra.mxu0 %vm316_vm0, %v321_v8  ;;  %844 = vmatmul.msk.bf16.vlgmr.msra.gmra.mxu2 %vm316_vm0, %v323_v9  ;;  %312 = vst.msk [vmem:[#allocation3] sm:$0xff] %vm307_vm1, %v1147_v26  ;;  %s1069_s6 = sshra.s32 %s689_s22, 4  ;;  %s1075_s10 = scalar_lea.hbm %s1437_s3, 32  ;;  %s1070_s6 = int_to_ptr.hbm [resolvable:$true] %s1069_s6 }
  0x38   : > { %843 = vmatmul.msk.bf16.vlgmr.msra.gmra.mxu1 %vm316_vm0, %v322_v10  ;;  %845 = vmatmul.msk.bf16.vlgmr.msra.gmra.mxu3 %vm316_vm0, %v324_v11  ;;  %313 = vst.msk [vmem:[#allocation3 + $0x8] sm:$0xff] %vm307_vm1, %v1147_v26  ;;  %s1071_s7 = scalar_lea.hbm %s1070_s6, 16  ;;  %p1076_p7 = scmp.lt.s32.totalorder %s1070_s6, %s1437_s3 }
  0x39   : > { %315 = vst.msk [vmem:[#allocation3 + $0x18] sm:$0xff] %vm307_vm1, %v1147_v26  ;;  %v1329_v27 = vld [vmem:[#allocation2] sm:$0xff]  ;;  %559 = vmatpush.bf16.msrb.mxu2 %v550_v44  ;;  %578 = vmatpush.bf16.msrb.mxu3 %v569_v46  ;;  %p1072_p4 = scmp.ne.s32.totalorder %s1070_s6, %s1071_s7  ;;  %p1077_p8 = scmp.lt.s32.totalorder %s1075_s10, %s1071_s7 }
  0x3a   : > { %317 = vst.msk [vmem:[#allocation4] sm:$0xff] %vm316_vm0, %v1147_v26  ;;  %v1341_v33 = vld [vmem:[#allocation2 + $0x8] sm:$0xff]  ;;  %521 = vmatpush.bf16.msrb.mxu0 %v512_v48  ;;  %540 = vmatpush.bf16.msrb.mxu1 %v531_v52 }
  0x3b   : > { %318 = vst.msk [vmem:[#allocation4 + $0x8] sm:$0xff] %vm316_vm0, %v1147_v26  ;;  %v1339_v31 = vld [vmem:[#allocation2 + $0x10] sm:$0xff]  ;;  %p1073_p5 = pnand %p1072_p4, %p1225_p9  ;;  %p1078_p10 = por %p1077_p8, %p1076_p7 }
  0x3c   : > { %319 = vst.msk [vmem:[#allocation4 + $0x10] sm:$0xff] %vm316_vm0, %v1147_v26  ;;  %v1354_v39 = vld [vmem:[#allocation2 + $0x18] sm:$0xff] }
  0x3d   : > { %320 = vst.msk [vmem:[#allocation4 + $0x18] sm:$0xff] %vm316_vm0, %v1147_v26  ;;  %p1074_p6 = pneg %p1073_p5 }
  0x3f   : > { %p1079_p13 = pnand %p1078_p10, %p1074_p6 }
  0xb4   : > { %v1305_v13 = vpop.f32.mrf.mxu0 }
  0xb5   : > { %v410_v14 = vsel %vm316_vm0, %v1305_v13, -inf  ;;  %v1309_v15 = vpop.f32.mrf.mxu1 }
  0xb6   : > { %411 = vmax.xlane.f32.xlu1 %v410_v14  ;;  %v413_v18 = vsel %vm316_vm0, %v1309_v15, -inf }
  0xba   : > { %v1311_v16 = vpop.f32.mrf.mxu2 }
  0xbb   : > { %v416_v17 = vsel %vm316_vm0, %v1311_v16, -inf  ;;  %v1317_v20 = vpop.f32.mrf.mxu3 }
  0xbc   : > { %417 = vmax.xlane.f32.xlu0 %v416_v17  ;;  %v347_v19 = vpop.f32.mrf.mxu0  ;;  %v419_v22 = vsel %vm316_vm0, %v1317_v20, -inf }
  0xbd   : > { %v366_v21 = vpop.f32.mrf.mxu1 }
  0xbe   : > { %414 = vmax.xlane.f32.xlu1 %v413_v18  ;;  %v472_v18 = vld [vmem:[#allocation3 + $0x10] sm:$0xff] }
  0xc2   : > { %v385_v23 = vpop.f32.mrf.mxu2 }
  0xc3   : > { %v404_v24 = vpop.f32.mrf.mxu3 }
  0xc4   : > { %420 = vmax.xlane.f32.xlu0 %v419_v22  ;;  %v470_v24 = vld [vmem:[#allocation3] sm:$0xff] }
 0x129   : > { %v412_v28 = vpop.xlane.xlu1 %411 }
 0x12a   : > { %v1332_v29 = vmax.f32 %v1329_v27, %v412_v28 }
 0x12c   : > { %v426_v30 = vsub.f32 %v1329_v27, %v1332_v29  ;;  %620 = vst.msk [vmem:[#allocation2] sm:$0xff] %vm307_vm1, %v1332_v29  ;;  %440 = vperm.xlu0 %939, %v1332_v29  }
 0x12e   : > { %v430_v10 = vmul.f32 1.442695, %v426_v30  ;;  %v471_v30 = vld [vmem:[#allocation3 + $0x8] sm:$0xff] }
 0x12f   : > { %v418_v32 = vpop.xlane.xlu0 %417 }
 0x130   : > { %v1344_v34 = vmax.f32 %v1339_v31, %v418_v32 }
 0x131   : > { %v415_v35 = vpop.xlane.xlu1 %414 }
 0x132   : > { %v428_v36 = vsub.f32 %v1339_v31, %v1344_v34  ;;  %622 = vst.msk [vmem:[#allocation2 + $0x10] sm:$0xff] %vm307_vm1, %v1344_v34  ;;  %v423_v37 = vmax.f32 %v1341_v33, %v415_v35  ;;  %450 = vperm.xlu2 %938, %v1344_v34   ;;  %v584_v31 = vld [vmem:[#allocation4] sm:$0xff] }
 0x134   : > { %v427_v38 = vsub.f32 %v1341_v33, %v423_v37  ;;  %621 = vst.msk [vmem:[#allocation2 + $0x8] sm:$0xff] %vm307_vm1, %v423_v37  ;;  %445 = vperm.xlu1 %940, %v423_v37   ;;  %v434_v11 = vmul.f32 1.442695, %v428_v36 }
 0x136   : > { %v432_v12 = vmul.f32 1.442695, %v427_v38 }
 0x137   : > { %v421_v40 = vpop.xlane.xlu0 %420 }
 0x138   : > { %v1357_v41 = vmax.f32 %v1354_v39, %v421_v40 }
 0x13a   : > { %v429_v42 = vsub.f32 %v1354_v39, %v1357_v41  ;;  %623 = vst.msk [vmem:[#allocation2 + $0x18] sm:$0xff] %vm307_vm1, %v1357_v41  ;;  %455 = vperm.xlu2 %938, %v1357_v41  }
 0x13c   : > { %v436_v17 = vmul.f32 1.442695, %v429_v42  ;;  %v586_v42 = vld [vmem:[#allocation4 + $0x10] sm:$0xff] }
 0x18c   : > { %v451_v49 = vpop.permute.xlu2 %450 }
 0x18d   : > { %v460_v51 = vsub.f32 %v1311_v16, %v451_v49 }
 0x18f   : > { %v466_v53 = vmul.f32 1.442695, %v460_v51 }
 0x191   : > { %941 = vpow2.f32 %v466_v53  ;;  %v585_v53 = vld [vmem:[#allocation4 + $0x8] sm:$0xff] }
 0x194   : > { %v456_v54 = vpop.permute.xlu2 %455 }
 0x195   : > { %v461_v55 = vsub.f32 %v1317_v20, %v456_v54 }
 0x197   : > { %v942_v56 = vpop.eup %941  ;;  %v468_v57 = vmul.f32 1.442695, %v461_v55 }
 0x198   : > { %v484_v58 = vsel %vm316_vm0, %v942_v56, 0.0  ;;  %v501_v59 = vpack.c.bf16 %v942_v56, %v942_v56 }
 0x199   : > { %943 = vpow2.f32 %v468_v57  ;;  %485 = vadd.xlane.f32.xlu0 %v484_v58  ;;  %v473_v57 = vld [vmem:[#allocation3 + $0x18] sm:$0xff] }
 0x19a   : > { %848 = vmatmul.msk.bf16.vlgmr.msrb.gmra.mxu2 %vm316_vm0, %v501_v59 }
 0x19e   : > { %v441_v60 = vpop.permute.xlu0 %440 }
 0x19f   : > { %v944_v61 = vpop.eup %943  ;;  %v458_v62 = vsub.f32 %v1305_v13, %v441_v60 }
 0x1a0   : > { %v502_v63 = vpack.c.bf16 %v944_v61, %v944_v61  ;;  %v487_v16 = vsel %vm316_vm0, %v944_v61, 0.0  ;;  %v587_v61 = vld [vmem:[#allocation4 + $0x18] sm:$0xff] }
 0x1a1   : > { %v462_v0 = vmul.f32 1.442695, %v458_v62 }
 0x1a2   : > { %849 = vmatmul.msk.bf16.vlgmr.msrb.gmra.mxu3 %vm316_vm0, %v502_v63 }
 0x1a3   : > { %945 = vpow2.f32 %v462_v0 }
 0x1a6   : > { %v446_v1 = vpop.permute.xlu1 %445 }
 0x1a7   : > { %v459_v2 = vsub.f32 %v1309_v15, %v446_v1 }
 0x1a9   : > { %v946_v3 = vpop.eup %945  ;;  %v464_v4 = vmul.f32 1.442695, %v459_v2 }
 0x1aa   : > { %v478_v5 = vsel %vm316_vm0, %v946_v3, 0.0  ;;  %v499_v6 = vpack.c.bf16 %v946_v3, %v946_v3 }
 0x1ab   : > { %947 = vpow2.f32 %v464_v4  ;;  %479 = vadd.xlane.f32.xlu2 %v478_v5 }
 0x1ac   : > { %846 = vmatmul.msk.bf16.vlgmr.msrb.gmra.mxu0 %vm316_vm0, %v499_v6  ;;  %949 = vpow2.f32 %v430_v10 }
 0x1ad   : > { %951 = vpow2.f32 %v434_v11 }
 0x1ae   : > { %953 = vpow2.f32 %v432_v12 }
 0x1af   : > { %955 = vpow2.f32 %v436_v17 }
 0x1b1   : > { %v948_v7 = vpop.eup %947 }
 0x1b2   : > { %v481_v8 = vsel %vm316_vm0, %v948_v7, 0.0  ;;  %v500_v9 = vpack.c.bf16 %v948_v7, %v948_v7  ;;  %v950_v13 = vpop.eup %949 }
 0x1b3   : > { %482 = vadd.xlane.f32.xlu1 %v481_v8  ;;  %v952_v14 = vpop.eup %951  ;;  %v474_v27 = vmul.f32 %v950_v13, %v470_v24 }
 0x1b4   : > { %847 = vmatmul.msk.bf16.vlgmr.msrb.gmra.mxu1 %vm316_vm0, %v500_v9  ;;  %v954_v15 = vpop.eup %953  ;;  %v476_v20 = vmul.f32 %v952_v14, %v472_v18 }
 0x1b5   : > { %v956_v19 = vpop.eup %955  ;;  %v475_v34 = vmul.f32 %v954_v15, %v471_v30 }
 0x1b6   : > { %v477_v58 = vmul.f32 %v956_v19, %v473_v57 }
 0x1c3   : > { %590 = vperm.xlu2 %938, %v950_v13  }
 0x1cb   : > { %600 = vperm.xlu2 %938, %v952_v14  }
 0x1cc   : > { %595 = vperm.xlu1 %940, %v954_v15  }
 0x1f4   : > { %488 = vadd.xlane.f32.xlu2 %v487_v16 }
 0x20c   : > { %v486_v21 = vpop.xlane.xlu0 %485  ;;  %605 = vperm.xlu2 %938, %v956_v19  }
 0x20d   : > { %v492_v22 = vadd.f32 %v486_v21, %v476_v20 }
 0x20f   : > { %497 = vst.msk [vmem:[#allocation3 + $0x10] sm:$0xff] %vm307_vm1, %v492_v22 }
 0x216   : > { %v633_v23 = vld [vmem:[#allocation3 + $0x10] sm:$0xff] }
 0x217   : > { %957 = vrcp.f32 %v633_v23 }
 0x21d   : > { %v958_v25 = vpop.eup %957  ;;  %v561_v26 = vpop.f32.mrf.mxu2 }
 0x21e   : > { %v480_v28 = vpop.xlane.xlu2 %479  ;;  %651 = vperm.xlu1 %940, %v958_v25  }
 0x21f   : > { %v490_v29 = vadd.f32 %v480_v28, %v474_v27 }
 0x221   : > { %495 = vst.msk [vmem:[#allocation3] sm:$0xff] %vm307_vm1, %v490_v29 }
 0x225   : > { %v563_v32 = vpop.f32.mrf.mxu2  ;;  %v580_v33 = vpop.f32.mrf.mxu3 }
 0x226   : > { %v483_v35 = vpop.xlane.xlu1 %482  ;;  %v591_v36 = vpop.permute.xlu2 %590 }
 0x227   : > { %v491_v37 = vadd.f32 %v483_v35, %v475_v34  ;;  %v608_v38 = vmul.f32 %v591_v36, %v584_v31 }
 0x228   : > { %v631_v39 = vld [vmem:[#allocation3] sm:$0xff] }
 0x229   : > { %496 = vst.msk [vmem:[#allocation3 + $0x8] sm:$0xff] %vm307_vm1, %v491_v37  ;;  %v523_v40 = vpop.f32.mrf.mxu0  ;;  %959 = vrcp.f32 %v631_v39 }
 0x22a   : > { %v612_v41 = vadd.f32 %v608_v38, %v523_v40 }
 0x22c   : > { %616 = vst.msk [vmem:[#allocation4] sm:$0xff] %vm316_vm0, %v612_v41 }
 0x22d   : > { %v582_v43 = vpop.f32.mrf.mxu3 }
 0x22e   : > { %v601_v44 = vpop.permute.xlu2 %600 }
 0x22f   : > { %v960_v45 = vpop.eup %959  ;;  %v610_v46 = vmul.f32 %v601_v44, %v586_v42 }
 0x230   : > { %641 = vperm.xlu0 %939, %v960_v45   ;;  %v632_v47 = vld [vmem:[#allocation3 + $0x8] sm:$0xff] }
 0x231   : > { %v614_v48 = vadd.f32 %v610_v46, %v561_v26  ;;  %v525_v49 = vpop.f32.mrf.mxu0  ;;  %v542_v50 = vpop.f32.mrf.mxu1  ;;  %961 = vrcp.f32 %v632_v47 }
 0x233   : > { %618 = vst.msk [vmem:[#allocation4 + $0x10] sm:$0xff] %vm316_vm0, %v614_v48  ;;  %v627_v11 = vld [vmem:[#allocation4] sm:$0xff] }
 0x237   : > { %v962_v51 = vpop.eup %961 }
 0x238   : > { %646 = vperm.xlu2 %938, %v962_v51  }
 0x239   : > { %v544_v52 = vpop.f32.mrf.mxu1 }
 0x23a   : > { %v629_v4 = vld [vmem:[#allocation4 + $0x10] sm:$0xff] }
 0x23e   : > { %v596_v54 = vpop.permute.xlu1 %595 }
 0x23f   : > { %v609_v55 = vmul.f32 %v596_v54, %v585_v53 }
 0x241   : > { %v613_v56 = vadd.f32 %v609_v55, %v542_v50 }
 0x243   : > { %617 = vst.msk [vmem:[#allocation4 + $0x8] sm:$0xff] %vm316_vm0, %v613_v56 }
 0x24a   : > { %v628_v6 = vld [vmem:[#allocation4 + $0x8] sm:$0xff] }
 0x267   : > { %v489_v59 = vpop.xlane.xlu2 %488 }
 0x268   : > { %v493_v60 = vadd.f32 %v489_v59, %v477_v58 }
 0x26a   : > { %498 = vst.msk [vmem:[#allocation3 + $0x18] sm:$0xff] %vm307_vm1, %v493_v60 }
 0x26f   : > { %v606_v62 = vpop.permute.xlu2 %605 }
 0x270   : > { %v611_v63 = vmul.f32 %v606_v62, %v587_v61 }
 0x271   : > { %v634_v0 = vld [vmem:[#allocation3 + $0x18] sm:$0xff] }
 0x272   : > { %v615_v1 = vadd.f32 %v611_v63, %v580_v33  ;;  %963 = vrcp.f32 %v634_v0 }
 0x274   : > { %619 = vst.msk [vmem:[#allocation4 + $0x18] sm:$0xff] %vm316_vm0, %v615_v1 }
 0x278   : > { %v964_v2 = vpop.eup %963 }
 0x279   : > { %656 = vperm.xlu2 %938, %v964_v2  }
 0x27b   : > { %v630_v15 = vld [vmem:[#allocation4 + $0x18] sm:$0xff] }
 0x290   : > { %v652_v3 = vpop.permute.xlu1 %651 }
 0x291   : > { %v661_v5 = vmul.f32 %v652_v3, %v629_v4 }
 0x292   : > { %v647_v7 = vpop.permute.xlu2 %646 }
 0x293   : > { %v665_v8 = vpack.c.bf16 %v661_v5, %v661_v5  ;;  %v660_v9 = vmul.f32 %v647_v7, %v628_v6 }
 0x295   : > { %670 = vst.msk [vmem:[%s301_s24 + $0x8] sm:$0xf] %vm667_vm3, %v665_v8  ;;  %v664_v10 = vpack.c.bf16 %v660_v9, %v660_v9 }
 0x297   : > { %669 = vst.msk [vmem:[%s301_s24 + $0x4] sm:$0xf] %vm667_vm3, %v664_v10 }
 0x2a2   : > { %v642_v12 = vpop.permute.xlu0 %641 }
 0x2a3   : > { %v659_v13 = vmul.f32 %v642_v12, %v627_v11 }
 0x2a5   : > { %v663_v14 = vpack.c.bf16 %v659_v13, %v659_v13 }
 0x2a7   : > { %668 = vst.msk [vmem:[%s301_s24] sm:$0xf] %vm667_vm3, %v663_v14 }
 0x2d3   : > { %v657_v16 = vpop.permute.xlu2 %656 }
 0x2d4   : > { %v662_v17 = vmul.f32 %v657_v16, %v630_v15 }
 0x2d6   : > { %v666_v18 = vpack.c.bf16 %v662_v17, %v662_v17 }
 0x2d8   : > { %671 = vst.msk [vmem:[%s301_s24 + $0xc] sm:$0xf] %vm667_vm3, %v666_v18 }
 0x2d9   : > { %1082 = shalt.err (!%p1079_p13)
}
 0x2da   : > { %s1148_s11 = smov 64   ;;  %s1149_s1 = smov 4  }
 0x2db   : > { %865 = dma.vmem_to_hbm [thread:$0]  (%p1225_p9), %s687_s21, 256, %s689_s22, %s673_s23, %s1148_s11, %s1148_s11, %s1149_s1  }
 0x2dc PF: > { %s1456_s20 = sld [smem:[#allocation17_spill]]  ;;  %s703_s28 = sand.u32 1, %s1121_s12  }
 0x2dd   : > { %p878_p0 = pnand %p827_p12, %p1232_p11  ;;  %s704_s16 = scalar_lea.sflag [#allocation7], %s703_s28 }
 0x2df   : > { %p879_p1 = pneg %p878_p0 }
 0x2e1   : > { %1116 = dma.done.wait (%p879_p1), %s704_s16, 256  }
 0x2e2   : > { %1118 = vsyncadd (%p879_p1), %s704_s16, 4294967040  ;;  %s22_s17 = sadd.s32 1, %s1456_s20   ;;  %s1457_s14 = sld [smem:[#allocation15_spill]] }
 0x2e3   : > { %p19_p2 = scmp.ge.s32.totalorder %s22_s17, 4   ;;  %s1458_s26 = sld [smem:[#allocation19_spill]] }
 0x2e4   : > { %s1459_s15 = sld [smem:[#allocation16_spill]]  ;;  %s1461_s12 = smov %s1125_s13 }
 0x2e5   : > { %s1460_s16 = sld [smem:[#allocation18_spill]]  ;;  %21 = sbr.rel (!%p19_p2) target bundleno = 10 (0xa), region = 109 }
 0x2e8   : > { %s1462_s13 = smov %s1457_s14 }
 0x2e9   : > { %s1463_s14 = smov %s1458_s26 }
 0x2ea   :  { %710 = vsyncpa [#allocation6], 1 }
 0x2eb   :  { %712 = vsyncpa [#allocation6 + $0x1], 1 }
 0x2ec   :  { %713 = vsyncpa [#allocation9], 1 }
 0x2ed   :  { %715 = vsyncpa [#allocation9 + $0x1], 1 }
 0x2ee   :  { %716 = vsyncpa [#allocation7], 1 }
 0x2ef   :  { %718 = vsyncpa [#allocation7 + $0x1], 1 }

</bundles_post_ra>
